<compile_context>
chip_gen: v5e
topology: v5e:2x2
jax: 0.10.0
libtpu: 0.0.40
codegen_flags: <defaults>
</compile_context>

<pallas_src>
import jax
import jax.numpy as jnp
from jax.experimental import pallas as pl
from jax.experimental.pallas import tpu as pltpu


def _round_up(x, m):
    return (x + m - 1) // m * m


def _patch_embed_kernel(patches_ref, w_ref, add_ref, out_ref):
    # patches_ref: (1, TM, K) bf16 | w_ref: (K, D) bf16 | add_ref: (TM, D) f32
    # out_ref: (1, TM, D)
    y = jnp.dot(patches_ref[0], w_ref[...], preferred_element_type=jnp.float32)
    out_ref[0] = (y + add_ref[...]).astype(out_ref.dtype)


def patch_embed(x, params, *, tm=512, out_dtype=jnp.bfloat16):
    """Forward pass of PatchEmbed.  x is NCHW; returns (emb, H//16, W//16)."""
    B, C, H, W = x.shape
    ph, pw = params["patch_size"]
    # The PyTorch forward hard-codes `// 16` for the patch grid while the conv
    # uses patch_size; they only agree for 16x16 patches -> make it explicit.
    assert (ph, pw) == (16, 16), "PatchEmbed.forward hard-codes //16; patch_size must be (16,16)"
    Hp, Wp = H // ph, W // pw
    N = Hp * Wp
    D = params["proj_w"].shape[0]
    K = C * ph * pw

    # --- glue: im2col in bf16 (stride==kernel conv == patch matmul).  With
    # allow_input_fusion=[0] below, XLA may fuse this cast/reshape/transpose
    # straight into the pallas_call operand instead of materializing it.
    xb = x.astype(jnp.bfloat16)
    patches = (xb.reshape(B, C, Hp, ph, Wp, pw)
                 .transpose(0, 2, 4, 1, 3, 5)              # (B, Hp, Wp, C, ph, pw)
                 .reshape(B, N, K))
    w = params["proj_w"].reshape(D, K).T.astype(jnp.bfloat16)            # (K, D)

    # --- glue: _get_pos_embed (bicubic resize of the spatial pos-embed grid).
    pre_h, pre_w = params["pretrain_grid"]
    pos = params["spatial_pos"].astype(jnp.float32)                      # (pre_h*pre_w, D)
    if (Hp, Wp) != (pre_h, pre_w):
        # TODO(synk): jax.image.resize "cubic" uses a=-0.5; PyTorch bicubic
        # (align_corners=False) uses a=-0.75, so this path is only approximate.
        pos = jax.image.resize(pos.reshape(pre_h, pre_w, D), (Hp, Wp, D),
                               method="cubic").reshape(N, D)

    # Fold conv bias + temporal pos embed (temp_len == 1 -> row 0) + spatial
    # pos into ONE (N, D) f32 add table.  Kept in f32: its HBM read is
    # amortized over B by the grid order below, and the add stays full
    # precision regardless of out_dtype.
    add_table = (pos
                 + params["proj_b"].reshape(1, D).astype(jnp.float32)
                 + params["temporal_pos"][0:1].astype(jnp.float32))       # (N, D)

    # --- tiling: TM patch rows per grid step.  No pad / post-slice: pl.cdiv
    # edge handling lets Pallas clip the ragged last block (its garbage input
    # rows only produce garbage output rows, which are masked on store).
    TM = min(tm, _round_up(N, 8))
    # v7x has 2 TensorCores: ensure the parallel grid has >= 2 steps when
    # B == 1 so both cores get work (no effect on v5e/v6e: 1 TC).
    if B == 1 and pl.cdiv(N, TM) < 2 and N > 8:
        TM = _round_up(pl.cdiv(N, 2), 8)
    n_tiles = pl.cdiv(N, TM)

    # Grid (n, b): b innermost -> add_table block index constant across
    # consecutive steps -> Pallas skips its re-DMA for every batch element.
    grid = (n_tiles, B)

    out_bytes = jnp.dtype(out_dtype).itemsize
    # Explicit VMEM budget (double buffers for the three streamed arrays plus
    # the default double buffer of the grid-invariant weight).
    vmem_bytes = 2 * (TM * K * 2 + TM * D * 4 + TM * D * out_bytes) + 2 * K * D * 2
    vmem_limit = int(min(max(2 * vmem_bytes, 32 * 1024 * 1024), 64 * 1024 * 1024))
    # TODO(synk): pipeline_mode=pl.Buffered(1) on the invariant weight spec
    # would drop one K*D bf16 VMEM buffer (only relevant for very large D on
    # v7x's 64 MiB VMEM); omitted to keep the BlockSpec maximally portable.

    out = pl.pallas_call(
        _patch_embed_kernel,
        out_shape=jax.ShapeDtypeStruct((B, N, D), out_dtype),
        grid_spec=pltpu.PrefetchScalarGridSpec(
            num_scalar_prefetch=0,
            grid=grid,
            in_specs=[
                pl.BlockSpec((1, TM, K), lambda n, b: (b, n, 0)),   # patches tile
                pl.BlockSpec((K, D), lambda n, b: (0, 0)),          # weight (invariant)
                pl.BlockSpec((TM, D), lambda n, b: (n, 0)),         # fused add table
            ],
            out_specs=pl.BlockSpec((1, TM, D), lambda n, b: (b, n, 0)),
        ),
        compiler_params=pltpu.CompilerParams(
            dimension_semantics=("parallel", "parallel"),
            vmem_limit_bytes=vmem_limit,
            allow_input_fusion=[0]),
    )(patches, w, add_table)

    # Module returns (embeddings, H // 16, W // 16).
    return out, H // 16, W // 16


def _reference(x, params):
    """Plain-JAX (f32) reference of the PatchEmbed forward for validation."""
    B, C, H, W = x.shape
    ph, pw = params["patch_size"]
    Hp, Wp = H // 16, W // 16
    N, D = Hp * Wp, params["proj_w"].shape[0]
    K = C * ph * pw
    patches = (x.reshape(B, C, Hp, ph, Wp, pw)
                .transpose(0, 2, 4, 1, 3, 5).reshape(B, N, K)).astype(jnp.float32)
    wt = params["proj_w"].reshape(D, K).T.astype(jnp.float32)
    y = jnp.einsum("bnk,kd->bnd", patches, wt,
                   precision=jax.lax.Precision.HIGHEST)
    y = y + params["proj_b"][None, None, :]
    y = y + params["spatial_pos"][None, :, :] + params["temporal_pos"][0][None, None, :]
    return y


if __name__ == "__main__":
    # Small config consistent with the module: patch size must stay 16 because
    # the forward hard-codes `// 16`; 64x64 image -> 4x4 = 16 patches.
    in_dim, out_dim, image_size = 3, 128, 64
    patch_size = (16, 16)
    B = 2
    pre_grid = (image_size // 16, image_size // 16)
    num_patches = pre_grid[0] * pre_grid[1]

    key = jax.random.PRNGKey(0)
    k_x, k_w, k_b, k_sp, k_tp = jax.random.split(key, 5)

    params = dict(
        patch_size=patch_size,
        pretrain_grid=pre_grid,
        proj_w=jax.random.normal(k_w, (out_dim, in_dim) + patch_size, jnp.float32) * 0.02,
        proj_b=jax.random.normal(k_b, (out_dim,), jnp.float32) * 0.02,
        spatial_pos=jax.random.normal(k_sp, (num_patches, out_dim), jnp.float32) * 0.02,
        temporal_pos=jax.random.normal(k_tp, (8, out_dim), jnp.float32) * 0.02,
    )

    x = jax.random.normal(k_x, (B, in_dim, image_size, image_size), jnp.float32)

    out, H16, W16 = patch_embed(x, params)
    out = jax.block_until_ready(out)

    ref = _reference(x, params)
    assert out.shape == (B, num_patches, out_dim), out.shape
    assert (H16, W16) == pre_grid
    # bf16 matmul inputs + bf16 output with f32 accumulation -> tolerance
    # widened vs the f32 reference.
    max_err = float(jnp.max(jnp.abs(out.astype(jnp.float32) - ref)))
    assert max_err < 5e-2, f"mismatch, max err {max_err}"
    print("KERNEL_OK")
</pallas_src>

<mosaic_0001>
module attributes {stable_mosaic.version = 11 : i64} {
  func.func @_patch_embed_kernel(%arg0: i32, %arg1: i32, %arg2: memref<1x16x768xbf16, #tpu.memory_space<vmem>>, %arg3: memref<768x128xbf16, #tpu.memory_space<vmem>>, %arg4: memref<16x128xf32, #tpu.memory_space<vmem>>, %arg5: memref<1x16x128xbf16, #tpu.memory_space<vmem>>) attributes {dimension_semantics = [#tpu.dimension_semantics<parallel>, #tpu.dimension_semantics<parallel>], iteration_bounds = array<i64: 1, 2>, scalar_prefetch = 0 : i64, scratch_operands = 0 : i64, tpu.core_type = #tpu.core_type<tc>, window_params = [{transform_indices = @transform_0, window_bounds = array<i64: 1, 16, 768>}, {pipeline_mode = #tpu.pipeline_mode<synchronous>, transform_indices = @transform_1, window_bounds = array<i64: 768, 128>}, {transform_indices = @transform_2, window_bounds = array<i64: 16, 128>}, {transform_indices = @transform_3, window_bounds = array<i64: 1, 16, 128>}]} {
    %c0 = arith.constant 0 : index
    %c0_0 = arith.constant 0 : index
    %c0_1 = arith.constant 0 : index
    %0 = vector.load %arg2[%c0, %c0_0, %c0_1] : memref<1x16x768xbf16, #tpu.memory_space<vmem>>, vector<1x16x768xbf16>
    %1 = vector.shape_cast %0 : vector<1x16x768xbf16> to vector<16x768xbf16>
    %c0_2 = arith.constant 0 : index
    %c0_3 = arith.constant 0 : index
    %2 = vector.load %arg3[%c0_2, %c0_3] : memref<768x128xbf16, #tpu.memory_space<vmem>>, vector<768x128xbf16>
    %cst = arith.constant dense<0.000000e+00> : vector<16x128xf32>
    %3 = tpu.matmul %1, %2, %cst {dimension_numbers = #tpu.dot_dimension_numbers<[1], [0], [0], [1], [0, 0, 1, 1], [], []>} : vector<16x768xbf16>, vector<768x128xbf16>, vector<16x128xf32> -> vector<16x128xf32>
    %c0_4 = arith.constant 0 : index
    %c0_5 = arith.constant 0 : index
    %4 = vector.load %arg4[%c0_4, %c0_5] : memref<16x128xf32, #tpu.memory_space<vmem>>, vector<16x128xf32>
    %5 = arith.addf %3, %4 : vector<16x128xf32>
    %6 = arith.truncf %5 : vector<16x128xf32> to vector<16x128xbf16>
    %c0_6 = arith.constant 0 : index
    %c0_7 = arith.constant 0 : index
    %c0_8 = arith.constant 0 : index
    %7 = vector.load %arg5[%c0_6, %c0_7, %c0_8] : memref<1x16x128xbf16, #tpu.memory_space<vmem>>, vector<1x16x128xbf16>
    %8 = vector.shape_cast %7 : vector<1x16x128xbf16> to vector<16x128xbf16>
    %9 = vector.shape_cast %6 : vector<16x128xbf16> to vector<1x16x128xbf16>
    tpu.vector_store %arg5[%c0_6, %c0_7, %c0_8], %9 {strides = array<i32>} : memref<1x16x128xbf16, #tpu.memory_space<vmem>>, vector<1x16x128xbf16>,
    return
  }
  func.func @transform_0(%arg0: i32, %arg1: i32) -> (i32, i32, i32) {
    %c0_i32 = arith.constant 0 : i32
    %c0_i32_0 = arith.constant 0 : i32
    return %arg1, %arg0, %c0_i32 : i32, i32, i32
  }
  func.func @transform_1(%arg0: i32, %arg1: i32) -> (i32, i32) {
    %c0_i32 = arith.constant 0 : i32
    %c0_i32_0 = arith.constant 0 : i32
    %c0_i32_1 = arith.constant 0 : i32
    return %c0_i32, %c0_i32_0 : i32, i32
  }
  func.func @transform_2(%arg0: i32, %arg1: i32) -> (i32, i32) {
    %c0_i32 = arith.constant 0 : i32
    %c0_i32_0 = arith.constant 0 : i32
    return %arg0, %c0_i32 : i32, i32
  }
  func.func @transform_3(%arg0: i32, %arg1: i32) -> (i32, i32, i32) {
    %c0_i32 = arith.constant 0 : i32
    %c0_i32_0 = arith.constant 0 : i32
    return %arg1, %arg0, %c0_i32 : i32, i32, i32
  }
}

</mosaic_0001>

<bundles_post_ra>
// kernel: tpu_custom_call.1
= control target key start
LH: loop header
LB: loop body
LE: loop exit
PB: predicated region body
PF: predicated region fallthrough
CT: control target
= control target key end

     0   :  { %8 = vsyncpa [#allocation3], 0  ;;  %s1645_s0 = inlined_call_operand.hbm [shape: bf16[2,16,768], index: 0, kind: input, shape index: {}]   ;;  %s1646_s1 = inlined_call_operand.hbm [shape: bf16[768,128], index: 1, kind: input, shape index: {}]   ;;  %s1647_s2 = inlined_call_operand.hbm [shape: f32[16,128], index: 2, kind: input, shape index: {}]   ;;  %s1648_s3 = inlined_call_operand.hbm [shape: bf16[2,16,128], index: 3, kind: output, shape index: {}]  }
   0x1   :  { %10 = vsyncpa [#allocation3 + $0x1], 0 }
   0x2   :  { %11 = vsyncpa [#allocation6], 0 }
   0x3   :  { %12 = vsyncpa [#allocation4], 0 }
   0x4   :  { %14 = vsyncpa [#allocation4 + $0x1], 0  ;;  %s1484_s12 = smov 0   ;;  %s1486_s13 = smov 0  }
   0x5   :  { %s1488_s14 = smov 0   ;;  %s1490_s15 = smov 0  }
   0x6   :  { %s1492_s16 = smov 0   ;;  %s1494_s17 = smov 0  }
   0x7 LB: > { %s890_s18 = sadd.s32 4294967295, %s1452_s17   ;;  %s891_s19 = sadd.s32 4294967294, %s1452_s17   ;;  %s1452_s17 = sphi %s1494_s17, %s20_s17   ;;  %s1448_s16 = sphi %s1492_s16, %s1659_s16   ;;  %s1444_s15 = sphi %s1490_s15, %s1658_s15   ;;  %s1440_s14 = sphi %s1488_s14, %s1657_s14   ;;  %s1436_s13 = sphi %s1486_s13, %s1656_s13   ;;  %s1432_s12 = sphi %s1484_s12, %s1655_s12  }
   0x8   : > { %p54_p0 = scmp.ne.s32.totalorder %s1436_s13, %s1432_s12  ;;  %p1518_p1 = scmp.eq.s32.totalorder %s890_s18, 0 }
   0x9   : > { %p1522_p2 = scmp.eq.s32.totalorder %s890_s18, 1  ;;  %p133_p3 = scmp.eq.s32.totalorder %s891_s19, 1 }
   0xa   : > { %p1528_p4 = por %p1518_p1, %p54_p0  ;;  %p892_p5 = scmp.ge.s32.totalorder %s1452_s17, 1 }
   0xb   : > { %p1533_p6 = por %p133_p3, %p54_p0  ;;  %p140_p7 = scmp.lt.s32.totalorder %s1452_s17, 3 }
   0xc   : > { %s151_s26 = sshll.u32 %s1646_s1, 4  ;;  %s1454_s28 = smov [#allocation5]   ;;  %s152_s26 = int_to_ptr.hbm [resolvable:$true] %s151_s26 }
   0xd   : > { %p1541_p8 = pnand %p892_p5, %p140_p7  ;;  %s153_s29 = sshll.u32 %s1454_s28, 4  ;;  %s154_s29 = int_to_ptr.vmem [resolvable:$true] %s153_s29 }
   0xe   : > { %p895_p11 = scmp.ge.s32.totalorder %s1452_s17, 2  ;;  %s168_s5 = sshll.u32 %s1647_s2, 4  ;;  %s169_s5 = int_to_ptr.hbm [resolvable:$true] %s168_s5 }
   0xf   : > { %p1197_p9 = pneg %p1541_p8  ;;  %s1455_s6 = smov 64  }
  0x10   : > { %s1456_s7 = smov 4   ;;  %s1457_s8 = smov [#allocation7]  }
  0x11   : > { %p1198_p10 = pnand %p1197_p9, %p1518_p1  ;;  %s170_s9 = sshll.u32 %s1457_s8, 4  ;;  %s171_s9 = int_to_ptr.vmem [resolvable:$true] %s170_s9 }
  0x12   : > { %s1458_s10 = smov 128   ;;  %s1459_s11 = smov 8  }
  0x13   : > { %1200 = dma.hbm_to_vmem [thread:$0]  (!%p1198_p10), %s152_s26, 6144, %s154_s29, [#allocation6], %s1455_s6, %s1455_s6, %s1456_s7  }
  0x14   : > { %1203 = dma.hbm_to_vmem [thread:$0]  (!%p1198_p10), %s169_s5, 256, %s171_s9, [#allocation6], %s1458_s10, %s1458_s10, %s1459_s11  }
  0x15   : > { %s29_s18 = sadd.s32 1, %s1448_s16  ;;  %s41_s19 = sadd.s32 1, %s1440_s14 }
  0x16   : > { %p30_p12 = scmp.ge.s32.totalorder %s29_s18, 2  ;;  %p48_p13 = scmp.ne.s32.totalorder %s1440_s14, %s1436_s13 }
  0x17   : > { %p49_p0 = scmp.eq.s32.totalorder %s1452_s17, 0  ;;  %p1214_p3 = scmp.lt.s32.totalorder %s1452_s17, 2 }
  0x18   : > { %s1661_s18 = smov (%p30_p12, %s29_s18), 0  ;;  %p1563_p7 = por %p1522_p2, %p48_p13 }
  0x19   : > { %p50_p5 = por %p49_p0, %p48_p13  ;;  %s36_s25 = ssub.s32 %s1448_s16, %s1661_s18 }
  0x1a   : > { %s184_s26 = sand.u32 1, %s1440_s14   ;;  %p39_p9 = scmp.eq.s32.totalorder %s36_s25, 0 }
  0x1b   : > { %s1182_s28 = smul.u32 48, %s184_s26  ;;  %p1205_p10 = pnand %p1214_p3, %p50_p5 }
  0x1c   : > { %s1571_s29 = scalar_select %p39_p9, %s1440_s14, %s41_s19  }
  0x1d   : > { %s1183_s30 = smul.u32 48, %s1448_s16  ;;  %s188_s4 = scalar_lea.vmem [#allocation2], %s1182_s28 }
  0x1e   : > { %s199_s5 = sshll.u32 %s188_s4, 4  ;;  %s185_s9 = scalar_lea.sflag [#allocation3], %s184_s26  ;;  %s200_s5 = int_to_ptr.vmem [resolvable:$true] %s199_s5 }
  0x1f   : > { %s196_s8 = scalar_lea.hbm %s1645_s0, %s1183_s30  ;;  %s1460_s10 = smov 384  }
  0x20   : > { %s197_s21 = sshll.u32 %s196_s8, 4  ;;  %s1461_s11 = smov 24   ;;  %s198_s21 = int_to_ptr.hbm [resolvable:$true] %s197_s21 }
  0x21   : > { %1207 = dma.hbm_to_vmem [thread:$0]  (!%p1205_p10), %s198_s21, 768, %s200_s5, %s185_s9, %s1460_s10, %s1460_s10, %s1461_s11  }
  0x22   : > { %211 = sbr.rel (%p1541_p8) target bundleno = 250 (0xfa), region = 32  ;;  %s1580_s19 = sand.u32 (!%p1541_p8), 1, %s1436_s13  }
  0x23   : > { %s1184_s25 = smul.u32 (!%p1541_p8), 48, %s1580_s19  ;;  %s214_s28 = scalar_lea.sflag (!%p1541_p8), [#allocation3], %s1580_s19 }
  0x25   : > { %s1584_s4 = scalar_lea.vmem (!%p1541_p8), [#allocation2], %s1184_s25 }
  0x27   : > { %1419 = dma.done.wait (%p1528_p4), %s214_s28, 768  }
  0x28   : > { %1421 = vsyncadd (%p1528_p4), %s214_s28, 4294966528 }
  0x29   : > { %1423 = dma.done.wait (%p1518_p1), [#allocation6], 6400  }
  0x2a   : > { %1425 = vsyncadd (%p1518_p1), [#allocation6], 4294960896  ;;  %v1135_v0 = vld [vmem:[#allocation5 + $0x38] sm:$0xff]  ;;  %v1134_v4 = vld [vmem:[#allocation5 + $0x30] sm:$0xff]  ;;  %s900_s20 = sshll.u32 %s1580_s19, 3  ;;  %s1176_s22 = sshll.u32 %s1444_s15, 3 }
  0x2b   : > { %v1143_v1 = vld [vmem:[#allocation5 + $0x78] sm:$0xff]  ;;  %676 = vmatpush.bf16.msra.mxu0 %v1135_v0  ;;  %v1142_v5 = vld [vmem:[#allocation5 + $0x70] sm:$0xff]  ;;  %v1133_v8 = vld [vmem:[#allocation5 + $0x28] sm:$0xff]  ;;  %s778_s30 = scalar_lea.hbm %s1648_s3, %s1176_s22  ;;  %s250_s5 = scalar_lea.vmem [#allocation8], %s900_s20 }
  0x2c   : > { %v1151_v2 = vld [vmem:[#allocation5 + $0xb8] sm:$0xff]  ;;  %690 = vmatpush.bf16.msra.mxu1 %v1143_v1  ;;  %v1150_v6 = vld [vmem:[#allocation5 + $0xb0] sm:$0xff]  ;;  %v1141_v9 = vld [vmem:[#allocation5 + $0x68] sm:$0xff]  ;;  %s779_s6 = sshll.u32 %s250_s5, 4  ;;  %s781_s7 = sshll.u32 %s778_s30, 4  ;;  %s780_s6 = int_to_ptr.vmem [resolvable:$true] %s779_s6  ;;  %s782_s7 = int_to_ptr.hbm [resolvable:$true] %s781_s7 }
  0x2d   : > { %v1159_v3 = vld [vmem:[#allocation5 + $0xf8] sm:$0xff]  ;;  %704 = vmatpush.bf16.msra.mxu2 %v1151_v2  ;;  %v1158_v7 = vld [vmem:[#allocation5 + $0xf0] sm:$0xff]  ;;  %v1149_v10 = vld [vmem:[#allocation5 + $0xa8] sm:$0xff]  ;;  %s765_s15 = scalar_lea.sflag [#allocation4], %s1580_s19  ;;  %s1380_s8 = sshra.s32 %s782_s7, 4  ;;  %s1381_s8 = int_to_ptr.hbm [resolvable:$true] %s1380_s8 }
  0x2e   : > { %718 = vmatpush.bf16.msra.mxu3 %v1159_v3  ;;  %v1157_v11 = vld [vmem:[#allocation5 + $0xe8] sm:$0xff]  ;;  %v1132_v12 = vld [vmem:[#allocation5 + $0x20] sm:$0xff]  ;;  %v1131_v16 = vld [vmem:[#allocation5 + $0x18] sm:$0xff]  ;;  %s1382_s21 = scalar_lea.hbm %s1381_s8, 8  ;;  %s1386_s11 = scalar_lea.hbm %s1648_s3, 16 }
  0x2f   : > { %677 = vmatpush.bf16.msra.mxu0 %v1134_v4  ;;  %v1140_v13 = vld [vmem:[#allocation5 + $0x60] sm:$0xff]  ;;  %v1139_v17 = vld [vmem:[#allocation5 + $0x58] sm:$0xff]  ;;  %v1130_v20 = vld [vmem:[#allocation5 + $0x10] sm:$0xff]  ;;  %p1383_p1 = scmp.ne.s32.totalorder %s1381_s8, %s1382_s21  ;;  %p1387_p8 = scmp.lt.s32.totalorder %s1381_s8, %s1648_s3 }
  0x30   : > { %691 = vmatpush.bf16.msra.mxu1 %v1142_v5  ;;  %v1148_v14 = vld [vmem:[#allocation5 + $0xa0] sm:$0xff]  ;;  %v1147_v18 = vld [vmem:[#allocation5 + $0x98] sm:$0xff]  ;;  %v1138_v21 = vld [vmem:[#allocation5 + $0x50] sm:$0xff]  ;;  %p1388_p12 = scmp.lt.s32.totalorder %s1386_s11, %s1382_s21 }
  0x31   : > { %705 = vmatpush.bf16.msra.mxu2 %v1150_v6  ;;  %v1156_v15 = vld [vmem:[#allocation5 + $0xe0] sm:$0xff]  ;;  %v1155_v19 = vld [vmem:[#allocation5 + $0xd8] sm:$0xff]  ;;  %v1146_v22 = vld [vmem:[#allocation5 + $0x90] sm:$0xff]  ;;  %p1384_p2 = pnand %p1383_p1, %p1563_p7 }
  0x32   : > { %719 = vmatpush.bf16.msra.mxu3 %v1158_v7  ;;  %v1154_v23 = vld [vmem:[#allocation5 + $0xd0] sm:$0xff]  ;;  %v1129_v24 = vld [vmem:[#allocation5 + $0x8] sm:$0xff]  ;;  %v1128_v28 = vld [vmem:[#allocation5] sm:$0xff]  ;;  %p1389_p13 = por %p1388_p12, %p1387_p8 }
  0x33   : > { %678 = vmatpush.bf16.msra.mxu0 %v1133_v8  ;;  %v1137_v25 = vld [vmem:[#allocation5 + $0x48] sm:$0xff]  ;;  %v1136_v29 = vld [vmem:[#allocation5 + $0x40] sm:$0xff]  ;;  %v1167_v34 = vld [vmem:[#allocation5 + $0x138] sm:$0xff]  ;;  %p1385_p4 = pneg %p1384_p2 }
  0x34   : > { %692 = vmatpush.bf16.msra.mxu1 %v1141_v9  ;;  %v1145_v26 = vld [vmem:[#allocation5 + $0x88] sm:$0xff]  ;;  %v903_v30 = vld [vmem:[%s1584_s4] sm:$0xf]  ;;  %v1122_v32 = vld [vmem:[%s1584_s4 + $0x4] sm:$0xf] }
  0x35   : > { %706 = vmatpush.bf16.msra.mxu2 %v1149_v10  ;;  %v1153_v27 = vld [vmem:[#allocation5 + $0xc8] sm:$0xff]  ;;  %v1175_v35 = vld [vmem:[#allocation5 + $0x178] sm:$0xff]  ;;  %v1144_v36 = vld [vmem:[#allocation5 + $0x80] sm:$0xff]  ;;  %p1390_p0 = pnand %p1389_p13, %p1385_p4 }
  0x36   : > { %720 = vmatpush.bf16.msra.mxu3 %v1157_v11  ;;  %v1125_v31 = vld [vmem:[%s1584_s4 + $0x14] sm:$0xf0]  ;;  %v905_v33 = vld [vmem:[%s1584_s4 + $0x18] sm:$0xf0]  ;;  %v1152_v37 = vld [vmem:[#allocation5 + $0xc0] sm:$0xff] }
  0x37   : > { %679 = vmatpush.bf16.msra.mxu0 %v1132_v12  ;;  %v911_v38 = vld [vmem:[%s1584_s4 + $0x8] sm:$0xf]  ;;  %v1126_v39 = vld [vmem:[%s1584_s4 + $0x1c] sm:$0xf0]  ;;  %v904_v40 = vor.u32 %v1125_v31, %v903_v30  ;;  %v1123_v41 = vld [vmem:[%s1584_s4 + $0xc] sm:$0xf]  ;;  %v908_v43 = vor.u32 %v1122_v32, %v905_v33 }
  0x38   : > { %693 = vmatpush.bf16.msra.mxu1 %v1140_v13  ;;  %v913_v42 = vld [vmem:[%s1584_s4 + $0x20] sm:$0xf0]  ;;  %v912_v46 = vor.u32 %v1126_v39, %v911_v38  ;;  %v1165_v48 = vld [vmem:[#allocation5 + $0x128] sm:$0xff]  ;;  %v1163_v52 = vld [vmem:[#allocation5 + $0x118] sm:$0xff] }
  0x39   : > { %707 = vmatpush.bf16.msra.mxu2 %v1148_v14  ;;  %v1166_v44 = vld [vmem:[#allocation5 + $0x130] sm:$0xff]  ;;  %v916_v47 = vor.u32 %v1123_v41, %v913_v42  ;;  %v1173_v49 = vld [vmem:[#allocation5 + $0x168] sm:$0xff]  ;;  %v1164_v50 = vld [vmem:[#allocation5 + $0x120] sm:$0xff] }
  0x3a   : > { %721 = vmatpush.bf16.msra.mxu3 %v1156_v15  ;;  %v1174_v45 = vld [vmem:[#allocation5 + $0x170] sm:$0xff]  ;;  %v1172_v51 = vld [vmem:[#allocation5 + $0x160] sm:$0xff]  ;;  %v1171_v53 = vld [vmem:[#allocation5 + $0x158] sm:$0xff] }
  0x3b   : > { %680 = vmatpush.bf16.msra.mxu0 %v1131_v16  ;;  %v1162_v54 = vld [vmem:[#allocation5 + $0x110] sm:$0xff]  ;;  %v1161_v56 = vld [vmem:[#allocation5 + $0x108] sm:$0xff]  ;;  %v1160_v58 = vld [vmem:[#allocation5 + $0x100] sm:$0xff] }
  0x3c   : > { %694 = vmatpush.bf16.msra.mxu1 %v1139_v17  ;;  %v1170_v55 = vld [vmem:[#allocation5 + $0x150] sm:$0xff]  ;;  %v1169_v57 = vld [vmem:[#allocation5 + $0x148] sm:$0xff]  ;;  %v1168_v59 = vld [vmem:[#allocation5 + $0x140] sm:$0xff] }
  0x3d   : > { %708 = vmatpush.bf16.msra.mxu2 %v1147_v18  ;;  %v919_v60 = vld [vmem:[%s1584_s4 + $0x10] sm:$0xf]  ;;  %v1127_v61 = vld [vmem:[%s1584_s4 + $0x24] sm:$0xf0]  ;;  %v1124_v62 = vld [vmem:[%s1584_s4 + $0x14] sm:$0xf] }
  0x3e   : > { %722 = vmatpush.bf16.msra.mxu3 %v1155_v19  ;;  %v921_v63 = vld [vmem:[%s1584_s4 + $0x28] sm:$0xf0]  ;;  %v920_v0 = vor.u32 %v1127_v61, %v919_v60  ;;  %v356_v5 = vld [vmem:[#allocation7] sm:$0xff] }
  0x3f   : > { %681 = vmatpush.bf16.msra.mxu0 %v1130_v20  ;;  %v924_v1 = vor.u32 %v1124_v62, %v921_v63  ;;  %v357_v6 = vld [vmem:[#allocation7 + $0x8] sm:$0xff] }
  0x40   : > { %695 = vmatpush.bf16.msra.mxu1 %v1138_v21 }
  0x41   : > { %709 = vmatpush.bf16.msra.mxu2 %v1146_v22 }
  0x42   : > { %723 = vmatpush.bf16.msra.mxu3 %v1154_v23 }
  0x43   : > { %682 = vmatpush.bf16.msra.mxu0 %v1129_v24 }
  0x44   : > { %696 = vmatpush.bf16.msra.mxu1 %v1137_v25 }
  0x45   : > { %710 = vmatpush.bf16.msra.mxu2 %v1145_v26 }
  0x46   : > { %724 = vmatpush.bf16.msra.mxu3 %v1153_v27 }
  0x47   : > { %683 = vmatpush.bf16.msra.mxu0 %v1128_v28 }
  0x48   : > { %697 = vmatpush.bf16.msra.mxu1 %v1136_v29 }
  0x49   : > { %711 = vmatpush.bf16.msra.mxu2 %v1144_v36 }
  0x4a   : > { %725 = vmatpush.bf16.msra.mxu3 %v1152_v37  ;;  %684 = vmatmul.bf16.vlgmr.msra.gmra.mxu0 %v904_v40 }
  0x4b   : > { %732 = vmatpush.bf16.msrb.mxu0 %v1167_v34  ;;  %698 = vmatmul.bf16.vlgmr.msra.gmra.mxu1 %v908_v43 }
  0x4c   : > { %746 = vmatpush.bf16.msrb.mxu1 %v1175_v35  ;;  %712 = vmatmul.bf16.vlgmr.msra.gmra.mxu2 %v912_v46 }
  0x4d   : > { %726 = vmatmul.bf16.vlgmr.msra.gmra.mxu3 %v916_v47 }
  0x4f   : > { %733 = vmatpush.bf16.msrb.mxu0 %v1166_v44 }
  0x50   : > { %747 = vmatpush.bf16.msrb.mxu1 %v1174_v45 }
  0x53   : > { %734 = vmatpush.bf16.msrb.mxu0 %v1165_v48 }
  0x54   : > { %748 = vmatpush.bf16.msrb.mxu1 %v1173_v49 }
  0x57   : > { %735 = vmatpush.bf16.msrb.mxu0 %v1164_v50 }
  0x58   : > { %749 = vmatpush.bf16.msrb.mxu1 %v1172_v51 }
  0x5b   : > { %736 = vmatpush.bf16.msrb.mxu0 %v1163_v52 }
  0x5c   : > { %750 = vmatpush.bf16.msrb.mxu1 %v1171_v53 }
  0x5f   : > { %737 = vmatpush.bf16.msrb.mxu0 %v1162_v54 }
  0x60   : > { %751 = vmatpush.bf16.msrb.mxu1 %v1170_v55 }
  0x63   : > { %738 = vmatpush.bf16.msrb.mxu0 %v1161_v56 }
  0x64   : > { %752 = vmatpush.bf16.msrb.mxu1 %v1169_v57 }
  0x67   : > { %739 = vmatpush.bf16.msrb.mxu0 %v1160_v58 }
  0x68   : > { %753 = vmatpush.bf16.msrb.mxu1 %v1168_v59 }
  0x6a   : > { %740 = vmatmul.bf16.vlgmr.msrb.gmra.mxu0 %v920_v0 }
  0x6b   : > { %754 = vmatmul.bf16.vlgmr.msrb.gmra.mxu1 %v924_v1 }
  0xc7   : > { %v685_v2 = vpop.f32.mrf.mxu0 }
  0xc8   : > { %v699_v3 = vpop.f32.mrf.mxu1  ;;  %v686_v9 = vadd.f32 %v685_v2, %v356_v5 }
  0xca   : > { %v700_v12 = vadd.f32 %v699_v3, %v686_v9 }
  0xcf   : > { %v713_v4 = vpop.f32.mrf.mxu2  ;;  %v687_v7 = vpop.f32.mrf.mxu0 }
  0xd0   : > { %v701_v8 = vpop.f32.mrf.mxu1  ;;  %v727_v10 = vpop.f32.mrf.mxu3  ;;  %v688_v11 = vadd.f32 %v687_v7, %v357_v6  ;;  %v714_v17 = vadd.f32 %v713_v4, %v700_v12 }
  0xd2   : > { %v702_v13 = vadd.f32 %v701_v8, %v688_v11  ;;  %v728_v20 = vadd.f32 %v727_v10, %v714_v17 }
  0xd7   : > { %v715_v14 = vpop.f32.mrf.mxu2 }
  0xd8   : > { %v716_v18 = vadd.f32 %v715_v14, %v702_v13  ;;  %v729_v19 = vpop.f32.mrf.mxu3 }
  0xda   : > { %v730_v21 = vadd.f32 %v729_v19, %v716_v18 }
  0xe7   : > { %v741_v15 = vpop.f32.mrf.mxu0 }
  0xe8   : > { %v755_v16 = vpop.f32.mrf.mxu1  ;;  %v742_v22 = vadd.f32 %v741_v15, %v728_v20 }
  0xea   : > { %v756_v26 = vadd.f32 %v755_v16, %v742_v22 }
  0xef   : > { %v743_v23 = vpop.f32.mrf.mxu0 }
  0xf0   : > { %v744_v24 = vadd.f32 %v743_v23, %v730_v21  ;;  %v757_v25 = vpop.f32.mrf.mxu1 }
  0xf2   : > { %v758_v27 = vadd.f32 %v757_v25, %v744_v24 }
  0xf4   : > { %v1180_v28 = vpack.c.bf16 %v758_v27, %v756_v26 }
  0xf6   : > { %1181 = vst [vmem:[%s250_s5] sm:$0xff] %v1180_v28  }
  0xf7   : > { %1393 = shalt.err (!%p1390_p0)
}
  0xf8   : > { %s1462_s19 = smov 64   ;;  %s1463_s4 = smov 4  }
  0xf9   : > { %1195 = dma.vmem_to_hbm [thread:$0]  (%p1563_p7), %s780_s6, 128, %s782_s7, %s765_s15, %s1462_s19, %s1462_s19, %s1463_s4  }
  0xfa PF: > { %s796_s20 = sand.u32 1, %s1432_s12   ;;  %p1209_p3 = pnand %p895_p11, %p1533_p6 }
  0xfb   : > { %s797_s22 = scalar_lea.sflag [#allocation4], %s796_s20 }
  0xfc   : > { %p1210_p5 = pneg %p1209_p3 }
  0xfe   : > { %1427 = dma.done.wait (%p1210_p5), %s797_s22, 128  }
  0xff   : > { %1429 = vsyncadd (%p1210_p5), %s797_s22, 4294967168  ;;  %s20_s17 = sadd.s32 1, %s1452_s17   ;;  %s1655_s12 = smov %s1436_s13 }
 0x100   : > { %p17_p9 = scmp.ge.s32.totalorder %s20_s17, 4   ;;  %s1656_s13 = smov %s1440_s14 }
 0x101   : > { %s1657_s14 = smov %s1571_s29  ;;  %s1658_s15 = smov %s1448_s16 }
 0x102   : > { %s1659_s16 = smov %s1661_s18  ;;  %19 = sbr.rel (!%p17_p9) target bundleno = 7 (0x7), region = 86 }
 0x107   :  { %803 = vsyncpa [#allocation3], 1 }
 0x108   :  { %805 = vsyncpa [#allocation3 + $0x1], 1 }
 0x109   :  { %806 = vsyncpa [#allocation6], 1 }
 0x10a   :  { %807 = vsyncpa [#allocation4], 1 }
 0x10b   :  { %809 = vsyncpa [#allocation4 + $0x1], 1 }

</bundles_post_ra>
